<compile_context>
chip_gen: v5e
topology: v5e:2x2
jax: 0.10.0
libtpu: 0.0.40
codegen_flags: <defaults>
</compile_context>

<pallas_src>
import functools
import math

import jax
import jax.numpy as jnp
import numpy as np
from jax.experimental import pallas as pl
from jax.experimental.pallas import tpu as pltpu


def _pe_kernel(c_ref, o_ref, *, row_tile):
    # c_ref: (2, lane) f32 constants:
    #   row 0 = freq'  = pack * div_term per lane (0 in padded lanes)
    #   row 1 = phase' = offset * div_term + (-pi/2 for even channels, 0 for odd)
    # o_ref: (row_tile, lane) output block; lane is a multiple of 128 (lane-dense vst).
    consts = c_ref[...]
    freq = consts[0:1, :]                                          # (1, lane)
    phase = consts[1:2, :]                                         # (1, lane)

    i = pl.program_id(0)
    local = jax.lax.broadcasted_iota(jnp.int32, o_ref.shape, 0)    # row index within block
    packed_row = (i * row_tile + local).astype(jnp.float32)        # global packed-row index
    # sin(z) = cos(z - pi/2): even channels carry -pi/2 inside phase', odd carry 0.
    o_ref[...] = jnp.cos(packed_row * freq + phase).astype(o_ref.dtype)


def _choose_row_tile(n_rows, lane, itemsize):
    """Packed-row tile: full extent for small tables, otherwise a multiple of 16
    that (a) keeps the double-buffered output block under ~24 MiB of VMEM (v7x
    has only 64 MiB physical), (b) stays >= 512 rows (per-step-overhead
    amortization plateau), and (c) yields ~4+ grid steps so the pipeline can
    overlap writeback and a v7x megacore can shard the parallel axis."""
    cap = ((12 * 1024 * 1024) // (lane * itemsize)) // 16 * 16
    cap = max(cap, 16)
    if n_rows <= 512 and n_rows <= cap:
        return n_rows                        # one full-extent block
    per_step = -(-n_rows // 4)               # cdiv(n_rows, 4)  -> ~4 grid steps
    per_step = -(-per_step // 16) * 16       # round up to a multiple of 16
    tile = min(cap, max(512, per_step))
    if tile >= n_rows:
        return n_rows
    return tile


def build_pe_table(embedding_dim, max_len, *, out_dtype=jnp.float32):
    """Build the full (1, max_len, D) positional-encoding table with one Pallas call."""
    D = int(embedding_dim)
    max_len = int(max_len)
    assert D % 2 == 0, "embedding_dim must be even (as in the PyTorch module)"
    assert max_len >= 1

    # Lane-dense packing: `pack` consecutive positions share one 128-lane-aligned row.
    pack = max(1, 128 // D) if D <= 128 else 1
    lane_used = pack * D
    lane = -(-lane_used // 128) * 128        # pad lane dim up to a multiple of 128
    n_rows = -(-max_len // pack)             # packed rows needed
    out_dtype = jnp.dtype(out_dtype)
    tile = _choose_row_tile(n_rows, lane, out_dtype.itemsize)

    # Host-folded per-lane constants.  div_term is computed exactly like the
    # reference (f32); folding done in f64 and cast once to minimize rounding.
    div = np.exp(np.arange(0, D, 2, dtype=np.float32) * -(math.log(10000.0) / D))
    freq_ch = np.repeat(div.astype(np.float64), 2)[:D]              # d -> div_term[d//2]
    phase_ch = np.tile(np.array([-math.pi / 2.0, 0.0]), D // 2)     # sin via cos shift
    off = np.repeat(np.arange(pack, dtype=np.float64), D)           # pos offset in packed row
    consts = np.zeros((2, lane), np.float32)
    consts[0, :lane_used] = (np.tile(freq_ch, pack) * pack).astype(np.float32)
    consts[1, :lane_used] = (off * np.tile(freq_ch, pack)
                             + np.tile(phase_ch, pack)).astype(np.float32)

    out = pl.pallas_call(
        functools.partial(_pe_kernel, row_tile=tile),
        out_shape=jax.ShapeDtypeStruct((n_rows, lane), out_dtype),
        grid_spec=pl.GridSpec(
            grid=(pl.cdiv(n_rows, tile),),
            in_specs=[pl.BlockSpec((2, lane), lambda i: (0, 0))],   # DMA'd once (constant block)
            out_specs=pl.BlockSpec((tile, lane), lambda i: (i, 0)),
        ),
        compiler_params=pltpu.CompilerParams(
            dimension_semantics=("parallel",),
            vmem_limit_bytes=32 * 1024 * 1024,
        ),
        cost_estimate=pl.CostEstimate(
            flops=3 * n_rows * lane,
            transcendentals=n_rows * lane,
            bytes_accessed=out_dtype.itemsize * n_rows * lane + 4 * 2 * lane,
        ),
    )(jnp.asarray(consts))

    # (n_rows, lane) -> drop lane padding -> (n_rows*pack, D) -> drop row padding.
    pe = out[:, :lane_used].reshape(n_rows * pack, D)[:max_len]
    return pe[None, :, :]                     # (1, max_len, D)


class PositionalEncoding:
    """JAX/Pallas drop-in for the CTLE PositionalEncoding forward pass."""

    def __init__(self, embedding_dim, max_len, *, dtype=jnp.float32):
        self.embedding_dim = embedding_dim
        self.max_len = max_len
        # Build the buffer once (like register_buffer); forward is a cheap slice.
        self.pe = jax.block_until_ready(
            build_pe_table(embedding_dim, max_len, out_dtype=dtype))

    def __call__(self, x):
        # shape of x: (B, T, *); only T = x.shape[1] is used.
        return self.pe[:, : x.shape[1], :]


@functools.lru_cache(maxsize=None)
def _cached_pe_table(embedding_dim, max_len, dtype_name):
    return build_pe_table(embedding_dim, max_len, out_dtype=jnp.dtype(dtype_name))


def positional_encoding(x, embedding_dim, max_len, *, dtype=jnp.float32):
    """Functional forward: pe[:, :x.shape[1]] from a table cached across calls."""
    T = x.shape[1]
    assert T <= max_len, "sequence length exceeds max_len"
    pe = _cached_pe_table(int(embedding_dim), int(max_len), jnp.dtype(dtype).name)
    return pe[:, :T, :]


if __name__ == "__main__":
    embedding_dim = 32
    max_len = 128
    B, T = 2, 8

    # x values are never read by the module's forward (only x.shape[1] is), but
    # build a deterministic input of the expected (B, T, hidden) shape anyway.
    key = jax.random.PRNGKey(0)
    x = jax.random.normal(key, (B, T, embedding_dim), dtype=jnp.float32)

    module = PositionalEncoding(embedding_dim, max_len)
    out = jax.block_until_ready(module(x))
    assert out.shape == (1, T, embedding_dim)

    out_fn = jax.block_until_ready(positional_encoding(x, embedding_dim, max_len))

    # Pure-numpy reference, identical to the PyTorch buffer construction.
    position = np.arange(T, dtype=np.float32)[:, None]
    div_term = np.exp(np.arange(0, embedding_dim, 2, dtype=np.float32)
                      * -(math.log(10000.0) / embedding_dim))
    ref = np.zeros((T, embedding_dim), np.float32)
    ref[:, 0::2] = np.sin(position * div_term)
    ref[:, 1::2] = np.cos(position * div_term)
    ref = ref[None]

    np.testing.assert_allclose(np.asarray(out), ref, rtol=1e-5, atol=1e-5)
    np.testing.assert_allclose(np.asarray(out_fn), ref, rtol=1e-5, atol=1e-5)
    print("KERNEL_OK")
</pallas_src>

<mosaic_0001>
module attributes {stable_mosaic.version = 11 : i64} {
  func.func @_pe_kernel(%arg0: i32, %arg1: memref<2x128xf32, #tpu.memory_space<vmem>>, %arg2: memref<32x128xf32, #tpu.memory_space<vmem>>) attributes {dimension_semantics = [#tpu.dimension_semantics<parallel>], iteration_bounds = array<i64: 1>, scalar_prefetch = 0 : i64, scratch_operands = 0 : i64, tpu.core_type = #tpu.core_type<tc>, window_params = [{pipeline_mode = #tpu.pipeline_mode<synchronous>, transform_indices = @transform_0, window_bounds = array<i64: 2, 128>}, {transform_indices = @transform_1, window_bounds = array<i64: 32, 128>}]} {
    %c0 = arith.constant 0 : index
    %c0_0 = arith.constant 0 : index
    %0 = vector.load %arg1[%c0, %c0_0] : memref<2x128xf32, #tpu.memory_space<vmem>>, vector<2x128xf32>
    %1 = vector.extract_strided_slice %0 {offsets = [0, 0], sizes = [1, 128], strides = [1, 1]} : vector<2x128xf32> to vector<1x128xf32>
    %2 = vector.extract_strided_slice %0 {offsets = [1, 0], sizes = [1, 128], strides = [1, 1]} : vector<2x128xf32> to vector<1x128xf32>
    %3 = tpu.iota {dimensions = array<i32: 0>} : vector<32x128xi32>
    %c32_i32 = arith.constant 32 : i32
    %4 = arith.muli %arg0, %c32_i32 : i32
    %5 = vector.broadcast %4 : i32 to vector<32x128xi32>
    %6 = arith.addi %5, %3 : vector<32x128xi32>
    %7 = arith.sitofp %6 : vector<32x128xi32> to vector<32x128xf32>
    %8 = vector.broadcast %1 : vector<1x128xf32> to vector<32x128xf32>
    %9 = arith.mulf %7, %8 : vector<32x128xf32>
    %10 = vector.broadcast %2 : vector<1x128xf32> to vector<32x128xf32>
    %11 = arith.addf %9, %10 : vector<32x128xf32>
    %12 = math.cos %11 : vector<32x128xf32>
    %c0_1 = arith.constant 0 : index
    %c0_2 = arith.constant 0 : index
    %13 = vector.load %arg2[%c0_1, %c0_2] : memref<32x128xf32, #tpu.memory_space<vmem>>, vector<32x128xf32>
    tpu.vector_store %arg2[%c0_1, %c0_2], %12 {strides = array<i32>} : memref<32x128xf32, #tpu.memory_space<vmem>>, vector<32x128xf32>,
    return
  }
  func.func @transform_0(%arg0: i32) -> (i32, i32) {
    %c0_i32 = arith.constant 0 : i32
    %c0_i32_0 = arith.constant 0 : i32
    %c0_i32_1 = arith.constant 0 : i32
    return %c0_i32, %c0_i32_0 : i32, i32
  }
  func.func @transform_1(%arg0: i32) -> (i32, i32) {
    %c0_i32 = arith.constant 0 : i32
    %c0_i32_0 = arith.constant 0 : i32
    return %arg0, %c0_i32 : i32, i32
  }
}

</mosaic_0001>

<bundles_post_ra>
// kernel: tpu_custom_call.1
= control target key start
LH: loop header
LB: loop body
LE: loop exit
PB: predicated region body
PF: predicated region fallthrough
CT: control target
= control target key end

     0   :  { %6 = vsyncpa [#allocation3], 0  ;;  %s1184_s0 = inlined_call_operand.hbm [shape: f32[2,128], index: 0, kind: input, shape index: {}]   ;;  %s1185_s1 = inlined_call_operand.hbm [shape: f32[32,128], index: 1, kind: output, shape index: {}]  }
   0x1   :  { %7 = vsyncpa [#allocation4], 0  ;;  %s13_s8 = sshll.u32 %s1184_s0, 4  ;;  %s763_s9 = smov [#allocation2]   ;;  %s14_s8 = int_to_ptr.hbm [resolvable:$true] %s13_s8 }
   0x2   :  { %s15_s10 = sshll.u32 %s763_s9, 4  ;;  %s16_s10 = int_to_ptr.vmem [resolvable:$true] %s15_s10 }
   0x3   :  { %18 = dma.hbm_to_vmem [thread:$0]  %s14_s8, 32, %s16_s10, [#allocation3]  }
   0x4   :  { %759 = dma.done.wait [#allocation3], 32  }
   0x5   :  { %760 = vsyncadd [#allocation3], 4294967264  ;;  %v24_v0 = vlaneseq  ;;  %v23_v9 = vld [vmem:[#allocation2] sm:$0x3]  ;;  %v764_v45 = vmov 683565275  }
   0x6   :  { %v39_v10 = vperm.slane %v23_v9, 0  ;;  %v44_v11 = vperm.slane %v23_v9, 1  ;;  %v765_v47 = vmov 2475754826   ;;  %v766_v49 = vmov 2131351028  }
   0x7   :  { %v25_v1 = vshrl.u32 %v24_v0, 7  ;;  %v767_v51 = vmov 2102212464   ;;  %v768_v53 = vmov 920167782   ;;  %s771_s0 = smov [#allocation5]  }
   0x8   :  { %v769_v62 = vmov 1326507024   ;;  %s673_s11 = sshll.u32 %s771_s0, 4  ;;  %s675_s14 = sshll.u32 %s1185_s1, 4  ;;  %s674_s11 = int_to_ptr.vmem [resolvable:$true] %s673_s11  ;;  %s676_s14 = int_to_ptr.hbm [resolvable:$true] %s675_s14 }
   0x9   :  { %v26_v2 = vadd.s32 8, %v25_v1  ;;  %v27_v3 = vadd.s32 16, %v25_v1  ;;  %v28_v4 = vadd.s32 24, %v25_v1  ;;  %v35_v5 = vcvt.s32.f32 %v25_v1  ;;  %s772_s15 = smov 128   ;;  %s773_s16 = smov 8  }
   0xb   :  { %v36_v6 = vcvt.s32.f32 %v26_v2  ;;  %v37_v7 = vcvt.s32.f32 %v27_v3  ;;  %v38_v8 = vcvt.s32.f32 %v28_v4  ;;  %v40_v12 = vmul.f32 %v39_v10, %v35_v5 }
   0xd   :  { %v41_v13 = vmul.f32 %v39_v10, %v36_v6  ;;  %v42_v14 = vmul.f32 %v39_v10, %v37_v7  ;;  %v43_v15 = vmul.f32 %v39_v10, %v38_v8  ;;  %v787_v16 = vadd.f32 %v44_v11, %v40_v12 }
   0xf   :  { %v789_v17 = vadd.f32 %v44_v11, %v41_v13  ;;  %v791_v18 = vadd.f32 %v44_v11, %v42_v14  ;;  %v793_v19 = vadd.f32 %v44_v11, %v43_v15  ;;  %v49_v20 = vand.u32 2147483647, %v787_v16 }
  0x10   :  { %v52_v21 = vand.u32 2139095040, %v787_v16 }
  0x11   :  { %v203_v22 = vand.u32 2147483647, %v789_v17  ;;  %v206_v23 = vand.u32 2139095040, %v789_v17  ;;  %v360_v24 = vand.u32 2139095040, %v791_v18  ;;  %v56_v26 = vand.u32 8388607, %v49_v20 }
  0x12   :  { %v53_v25 = vshrl.u32 %v52_v21, 23 }
  0x13   :  { %v207_v27 = vshrl.u32 %v206_v23, 23  ;;  %v210_v28 = vand.u32 8388607, %v203_v22  ;;  %v57_v30 = vor.u32 8388608, %v56_v26  ;;  %v361_v32 = vshrl.u32 %v360_v24, 23 }
  0x14   :  { %v688_v29 = vadd.s32 4294967169, %v53_v25 }
  0x15   :  { %v691_v31 = vadd.s32 4294967169, %v207_v27  ;;  %v211_v34 = vor.u32 8388608, %v210_v28  ;;  %v804_v37 = vshll.u32 %v57_v30, 8  ;;  %v694_v38 = vadd.s32 4294967169, %v361_v32 }
  0x16   :  { %v59_v33 = vadd.s32 1, %v688_v29 }
  0x17   :  { %v213_v35 = vadd.s32 1, %v691_v31  ;;  %v810_v43 = vshll.u32 %v211_v34, 8  ;;  %v98_v55 = vand.u32 65535, %v804_v37  ;;  %v818_v56 = vadd.s32 1, %v694_v38 }
  0x18   :  { %vm60_vm0 = vcmp.gt.s32.totalorder %v59_v33, 0  ;;  %v99_v60 = vshrl.u32 %v804_v37, 16 }
  0x19   :  { %v61_v36 = vsel %vm60_vm0, %v59_v33, 0  ;;  %vm214_vm1 = vcmp.gt.s32.totalorder %v213_v35, 0  ;;  %vm368_vm15 = vcmp.gt.s32.totalorder %v818_v56, 0 }
  0x1a   :  { %v63_v39 = vand.u32 31, %v61_v36  ;;  %v215_v40 = vsel %vm214_vm1, %v213_v35, 0  ;;  %v806_v41 = vshrl.u32 %v61_v36, 5 }
  0x1b   :  { %v808_v42 = vand.u32 31, %v215_v40  ;;  %v838_v9 = vshrl.u32 %v215_v40, 5 }
  0x1c   :  { %v64_v44 = vsub.s32 32, %v63_v39  ;;  %v66_v46 = vshll.u32 %v764_v45, %v63_v39  ;;  %v69_v48 = vshll.u32 %v765_v47, %v63_v39  ;;  %v72_v50 = vshll.u32 %v766_v49, %v63_v39 }
  0x1d   :  { %v75_v52 = vshll.u32 %v767_v51, %v63_v39  ;;  %v78_v54 = vshll.u32 %v768_v53, %v63_v39  ;;  %vm81_vm2 = vcmp.lt.s32.totalorder %v806_v41, 1  ;;  %vm84_vm3 = vcmp.lt.s32.totalorder %v806_v41, 4 }
  0x1e   :  { %v67_v57 = vshrl.u32 %v765_v47, %v64_v44  ;;  %v70_v58 = vshrl.u32 %v766_v49, %v64_v44  ;;  %v73_v59 = vshrl.u32 %v767_v51, %v64_v44  ;;  %v76_v61 = vshrl.u32 %v768_v53, %v64_v44 }
  0x1f   :  { %v79_v63 = vshrl.u32 %v769_v62, %v64_v44  ;;  %v829_v3 = vsub.s32 32, %v808_v42  ;;  %v65_v4 = vshrl.u32 %v764_v45, %v64_v44  ;;  %vm83_vm4 = vcmp.lt.s32.totalorder %v806_v41, 3 }
  0x20   :  { %v68_v0 = vor.u32 %v67_v57, %v66_v46  ;;  %v71_v1 = vor.u32 %v70_v58, %v69_v48  ;;  %v74_v2 = vor.u32 %v73_v59, %v72_v50  ;;  %v77_v5 = vor.u32 %v76_v61, %v75_v52 }
  0x21   :  { %v80_v6 = vor.u32 %v79_v63, %v78_v54  ;;  %vm82_vm5 = vcmp.lt.s32.totalorder %v806_v41, 2  ;;  %v220_v12 = vshll.u32 %v764_v45, %v808_v42  ;;  %v223_v13 = vshll.u32 %v765_v47, %v808_v42 }
  0x22   :  { %v89_v7 = vsel %vm81_vm2, %v68_v0, %v71_v1  ;;  %v93_v8 = vsel %vm81_vm2, %v71_v1, %v74_v2  ;;  %v90_v10 = vsel %vm84_vm3, %v77_v5, 920167782  ;;  %v86_v14 = vsel %vm84_vm3, %v74_v2, 2102212464 }
  0x23   :  { %v94_v11 = vsel %vm84_vm3, %v80_v6, 1326507024  ;;  %v91_v15 = vsel %vm83_vm4, %v74_v2, %v90_v10  ;;  %v221_v23 = vshrl.u32 %v765_v47, %v829_v3  ;;  %v85_v24 = vsel %vm81_vm2, %v65_v4, %v68_v0 }
  0x24   :  { %v95_v21 = vsel %vm83_vm4, %v77_v5, %v94_v11  ;;  %v92_v25 = vsel %vm82_vm5, %v89_v7, %v91_v15  ;;  %v224_v27 = vshrl.u32 %v766_v49, %v829_v3  ;;  %v87_v32 = vsel %vm83_vm4, %v71_v1, %v86_v14 }
  0x25   :  { %v96_v26 = vsel %vm82_vm5, %v93_v8, %v95_v21  ;;  %v122_v30 = vand.u32 65535, %v92_v25  ;;  %v123_v31 = vshrl.u32 %v92_v25, 16  ;;  %v866_v33 = vor.u32 %v221_v23, %v220_v12 }
  0x26   :  { %v100_v28 = vand.u32 65535, %v96_v26  ;;  %v101_v29 = vshrl.u32 %v96_v26, 16  ;;  %v868_v34 = vor.u32 %v224_v27, %v223_v13  ;;  %v226_v35 = vshll.u32 %v766_v49, %v808_v42 }
  0x27   :  { %v227_v40 = vshrl.u32 %v767_v51, %v829_v3  ;;  %v124_v46 = vmul.u32 %v122_v30, %v98_v55  ;;  %v125_v48 = vmul.u32 %v123_v31, %v98_v55  ;;  %v126_v50 = vmul.u32 %v122_v30, %v99_v60 }
  0x28   :  { %v102_v36 = vmul.u32 %v100_v28, %v98_v55  ;;  %v103_v38 = vmul.u32 %v101_v29, %v98_v55  ;;  %v104_v39 = vmul.u32 %v100_v28, %v99_v60  ;;  %v105_v44 = vmul.u32 %v101_v29, %v99_v60 }
  0x29   :  { %v127_v58 = vmul.u32 %v123_v31, %v99_v60  ;;  %v128_v61 = vshll.u32 %v125_v48, 16  ;;  %v129_v63 = vshrl.u32 %v125_v48, 16  ;;  %v130_v0 = vshll.u32 %v126_v50, 16 }
  0x2a   :  { %v106_v52 = vshll.u32 %v103_v38, 16  ;;  %v107_v54 = vshrl.u32 %v103_v38, 16  ;;  %v108_v57 = vshll.u32 %v104_v39, 16  ;;  %v109_v59 = vshrl.u32 %v104_v39, 16 }
  0x2b   :  { %v131_v2 = vshrl.u32 %v126_v50, 16  ;;  %v229_v4 = vshll.u32 %v767_v51, %v808_v42  ;;  %v770_v5 = vmov 0   ;;  %vm132_vm7 = vc.u32 %v124_v46, %v128_v61 }
  0x2c   :  { %vm110_vm6 = vc.u32 %v102_v36, %v106_v52  ;;  %v112_v1 = vadd.s32 %v106_v52, %v102_v36  ;;  %v134_v55 = vadd.s32 %v128_v61, %v124_v46  ;;  %v230_v7 = vshrl.u32 %v768_v53, %v829_v3 }
  0x2d   :  { %v111_v6 = vsel %vm110_vm6, 1, %v770_v5  ;;  %v133_v60 = vsel %vm132_vm7, 1, %v770_v5  ;;  %v232_v10 = vshll.u32 %v768_v53, %v808_v42  ;;  %v228_v13 = vor.u32 %v227_v40, %v226_v35 }
  0x2e   :  { %v113_v8 = vadd.s32 %v111_v6, %v105_v44  ;;  %vm114_vm8 = vc.u32 %v112_v1, %v108_v57  ;;  %v135_v12 = vadd.s32 %v133_v60, %v127_v58  ;;  %vm136_vm9 = vc.u32 %v134_v55, %v130_v0 }
  0x2f   :  { %v115_v11 = vsel %vm114_vm8, 1, %v770_v5  ;;  %v137_v15 = vsel %vm136_vm9, 1, %v770_v5  ;;  %v231_v21 = vor.u32 %v230_v7, %v229_v4  ;;  %v233_v23 = vshrl.u32 %v769_v62, %v829_v3 }
  0x30   :  { %v117_v14 = vadd.s32 %v115_v11, %v113_v8  ;;  %v886_v25 = vadd.s32 %v134_v55, %v130_v0  ;;  %v139_v26 = vadd.s32 %v137_v15, %v135_v12  ;;  %vm235_vm10 = vcmp.lt.s32.totalorder %v838_v9, 1 }
  0x31   :  { %vm237_vm11 = vcmp.lt.s32.totalorder %v838_v9, 3  ;;  %v234_v27 = vor.u32 %v233_v23, %v232_v10  ;;  %vm236_vm12 = vcmp.lt.s32.totalorder %v838_v9, 2  ;;  %vm238_vm13 = vcmp.lt.s32.totalorder %v838_v9, 4 }
  0x32   :  { %v118_v42 = vadd.s32 %v117_v14, %v107_v54  ;;  %v88_v28 = vsel %vm82_vm5, %v85_v24, %v87_v32  ;;  %v140_v29 = vadd.s32 %v139_v26, %v129_v63  ;;  %v243_v30 = vsel %vm235_vm10, %v866_v33, %v868_v34 }
  0x33   :  { %v244_v31 = vsel %vm238_vm13, %v231_v21, 920167782  ;;  %v247_v38 = vsel %vm235_vm10, %v868_v34, %v228_v13  ;;  %v252_v41 = vand.u32 65535, %v810_v43  ;;  %v248_v39 = vsel %vm238_vm13, %v234_v27, 1326507024 }
  0x34   :  { %v900_v35 = vadd.s32 %v118_v42, %v109_v59  ;;  %v245_v36 = vsel %vm237_vm11, %v228_v13, %v244_v31  ;;  %v141_v24 = vadd.s32 %v140_v29, %v131_v2  ;;  %v253_v40 = vshrl.u32 %v810_v43, 16 }
  0x35   :  { %v246_v32 = vsel %vm236_vm12, %v243_v30, %v245_v36  ;;  %v142_v44 = vmul.u32 %v804_v37, %v88_v28  ;;  %v249_v46 = vsel %vm237_vm11, %v231_v21, %v248_v39  ;;  %v219_v57 = vshrl.u32 %v764_v45, %v829_v3 }
  0x36   :  { %vm144_vm14 = vc.u32 %v900_v35, %v886_v25  ;;  %v276_v48 = vand.u32 65535, %v246_v32  ;;  %v145_v50 = vadd.s32 1, %v141_v24  ;;  %v250_v52 = vsel %vm236_vm12, %v247_v38, %v249_v46 }
  0x37   :  { %v277_v54 = vshrl.u32 %v246_v32, 16  ;;  %v254_v58 = vand.u32 65535, %v250_v52  ;;  %v255_v59 = vshrl.u32 %v250_v52, 16  ;;  %v240_v61 = vsel %vm238_vm13, %v228_v13, 2102212464 }
  0x38   :  { %v146_v37 = vsel %vm144_vm14, %v145_v50, %v141_v24  ;;  %v280_v0 = vmul.u32 %v276_v48, %v253_v40  ;;  %v278_v6 = vmul.u32 %v276_v48, %v252_v41  ;;  %v357_v8 = vand.u32 2147483647, %v791_v18 }
  0x39   :  { %v279_v63 = vmul.u32 %v277_v54, %v252_v41  ;;  %v147_v1 = vadd.s32 %v146_v37, %v142_v44  ;;  %v256_v2 = vmul.u32 %v254_v58, %v252_v41  ;;  %v257_v4 = vmul.u32 %v255_v59, %v252_v41 }
  0x3a   :  { %v258_v55 = vmul.u32 %v254_v58, %v253_v40  ;;  %v369_v3 = vsel %vm368_vm15, %v818_v56, 0  ;;  %v239_v10 = vsel %vm235_vm10, %v219_v57, %v866_v33  ;;  %v259_v11 = vmul.u32 %v255_v59, %v253_v40 }
  0x3b   :  { %v282_v7 = vshll.u32 %v279_v63, 16  ;;  %v148_v60 = vadd.s32 536870912, %v147_v1  ;;  %v260_v12 = vshll.u32 %v257_v4, 16  ;;  %v241_v13 = vsel %vm237_vm11, %v868_v34, %v240_v61 }
  0x3c   :  { %v262_v14 = vshll.u32 %v258_v55, 16  ;;  %v281_v15 = vmul.u32 %v277_v54, %v253_v40  ;;  %v284_v21 = vshll.u32 %v280_v0, 16  ;;  %v371_v33 = vand.u32 31, %v369_v3 }
  0x3d   :  { %v933_v23 = vshrl.u32 %v148_v60, 30  ;;  %vm264_vm0 = vc.u32 %v256_v2, %v260_v12  ;;  %v266_v26 = vadd.s32 %v260_v12, %v256_v2  ;;  %vm286_vm1 = vc.u32 %v278_v6, %v282_v7 }
  0x3e   :  { %v265_v56 = vsel %vm264_vm0, 1, %v770_v5  ;;  %v287_v42 = vsel %vm286_vm1, 1, %v770_v5  ;;  %v288_v27 = vadd.s32 %v282_v7, %v278_v6  ;;  %v261_v29 = vshrl.u32 %v257_v4, 16 }
  0x3f   :  { %v150_v28 = vshll.u32 %v933_v23, 30  ;;  %v267_v30 = vadd.s32 %v265_v56, %v259_v11  ;;  %vm268_vm2 = vc.u32 %v266_v26, %v262_v14  ;;  %v283_v31 = vshrl.u32 %v279_v63, 16 }
  0x40   :  { %v269_v34 = vsel %vm268_vm2, 1, %v770_v5  ;;  %v289_v36 = vadd.s32 %v287_v42, %v281_v15  ;;  %vm290_vm3 = vc.u32 %v288_v27, %v284_v21  ;;  %v263_v41 = vshrl.u32 %v258_v55, 16 }
  0x41   :  { %v151_v38 = vsub.s32 %v147_v1, %v150_v28  ;;  %v271_v24 = vadd.s32 %v269_v34, %v267_v30  ;;  %v291_v32 = vsel %vm290_vm3, 1, %v770_v5  ;;  %v285_v39 = vshrl.u32 %v280_v0, 16 }
  0x42   :  { %v293_v40 = vadd.s32 %v291_v32, %v289_v36  ;;  %v940_v44 = vsub.s32 32, %v371_v33  ;;  %v942_v50 = vadd.s32 %v288_v27, %v284_v21  ;;  %v242_v52 = vsel %vm236_vm12, %v239_v10, %v241_v13 }
  0x43   :  { %vm152_vm4 = vcmp.lt.s32.totalorder %v151_v38, 0  ;;  %v153_v46 = vsub.s32 0, %v151_v38  ;;  %v272_v48 = vadd.s32 %v271_v24, %v261_v29  ;;  %v364_v59 = vand.u32 8388607, %v357_v8 }
  0x44   :  { %v294_v54 = vadd.s32 %v293_v40, %v283_v31  ;;  %v374_v63 = vshll.u32 %v764_v45, %v371_v33  ;;  %v375_v0 = vshrl.u32 %v765_v47, %v940_v44  ;;  %v143_v1 = vadd.s32 %v886_v25, %v900_v35 }
  0x45   :  { %v154_v57 = vsel %vm152_vm4, %v153_v46, %v151_v38  ;;  %v946_v58 = vadd.s32 %v272_v48, %v263_v41  ;;  %v296_v9 = vmul.u32 %v810_v43, %v242_v52  ;;  %v958_v2 = vshrl.u32 %v369_v3, 5 }
  0x46   :  { %v155_v37 = vclz %v154_v57  ;;  %v295_v61 = vadd.s32 %v294_v54, %v285_v39  ;;  %v383_v55 = vshll.u32 %v767_v51, %v371_v33  ;;  %v384_v7 = vshrl.u32 %v768_v53, %v940_v44 }
  0x47   :  { %vm298_vm5 = vc.u32 %v946_v58, %v942_v50  ;;  %v377_v60 = vshll.u32 %v765_v47, %v371_v33  ;;  %v378_v10 = vshrl.u32 %v766_v49, %v940_v44  ;;  %v380_v25 = vshll.u32 %v766_v49, %v371_v33 }
  0x48   :  { %v689_v4 = vadd.s32 4294967294, %v155_v37  ;;  %v299_v6 = vadd.s32 1, %v295_v61  ;;  %v381_v43 = vshrl.u32 %v767_v51, %v940_v44  ;;  %v173_v35 = vsub.s32 4, %v933_v23 }
  0x49   :  { %v376_v11 = vor.u32 %v375_v0, %v374_v63  ;;  %v386_v14 = vshll.u32 %v768_v53, %v371_v33  ;;  %v387_v15 = vshrl.u32 %v769_v62, %v940_v44  ;;  %v385_v42 = vor.u32 %v384_v7, %v383_v55 }
  0x4a   :  { %vm690_vm6 = vcmp.lt.s32.totalorder %v689_v4, 0  ;;  %v300_v3 = vsel %vm298_vm5, %v299_v6, %v295_v61  ;;  %v379_v28 = vor.u32 %v378_v10, %v377_v60  ;;  %v382_v29 = vor.u32 %v381_v43, %v380_v25 }
  0x4b   :  { %v158_v12 = vsel %vm690_vm6, 0, %v689_v4  ;;  %v301_v13 = vadd.s32 %v300_v3, %v296_v9  ;;  %vm389_vm7 = vcmp.lt.s32.totalorder %v958_v2, 1  ;;  %vm391_vm8 = vcmp.lt.s32.totalorder %v958_v2, 3 }
  0x4c   :  { %v159_v21 = vsub.s32 32, %v158_v12  ;;  %v160_v26 = vshll.u32 %v151_v38, %v158_v12  ;;  %v163_v56 = vsub.s32 4294967266, %v158_v12  ;;  %vm392_vm9 = vcmp.lt.s32.totalorder %v958_v2, 4 }
  0x4d   :  { %v302_v27 = vadd.s32 536870912, %v301_v13  ;;  %vm51_vm10 = vcmp.lt.s32.totalorder %v787_v16, 0  ;;  %v365_v31 = vor.u32 8388608, %v364_v59  ;;  %v388_v36 = vor.u32 %v387_v15, %v386_v14 }
  0x4e   :  { %v161_v30 = vshrl.u32 %v143_v1, %v159_v21  ;;  %v164_v34 = vadd.s32 127, %v163_v56  ;;  %v174_v24 = vsel %vm51_vm10, %v173_v35, %v933_v23  ;;  %v398_v32 = vsel %vm392_vm9, %v385_v42, 920167782 }
  0x4f   :  { %v977_v33 = vshrl.u32 %v302_v27, 30  ;;  %vm390_vm11 = vcmp.lt.s32.totalorder %v958_v2, 2  ;;  %v397_v40 = vsel %vm389_vm7, %v376_v11, %v379_v28  ;;  %v399_v46 = vsel %vm391_vm8, %v382_v29, %v398_v32 }
  0x50   :  { %v162_v38 = vor.u32 %v161_v30, %v160_v26  ;;  %v165_v41 = vshll.u32 %v164_v34, 23  ;;  %vm992_vm12 = vcmp.le.f32.partialorder %v49_v20, 0.7853982  ;;  %v401_v54 = vsel %vm389_vm7, %v379_v28, %v382_v29 }
  0x51   :  { %v304_v39 = vshll.u32 %v977_v33, 30  ;;  %v176_v57 = vsel %vm992_vm12, 0, %v174_v24  ;;  %v402_v37 = vsel %vm392_vm9, %v388_v36, 1326507024  ;;  %v1002_v61 = vshll.u32 %v365_v31, 8 }
  0x52   :  { %v166_v23 = vor.u32 4788187, %v165_v41  ;;  %v169_v52 = vcvt.s32.f32 %v162_v38  ;;  %v373_v20 = vshrl.u32 %v764_v45, %v940_v44  ;;  %v400_v0 = vsel %vm390_vm11, %v397_v40, %v399_v46 }
  0x53   :  { %v305_v59 = vsub.s32 %v301_v13, %v304_v39  ;;  %v403_v1 = vsel %vm391_vm8, %v385_v42, %v402_v37  ;;  %v406_v6 = vand.u32 65535, %v1002_v61  ;;  %v407_v7 = vshrl.u32 %v1002_v61, 16 }
  0x54   :  { %v167_v63 = vand.u32 2147483647, %v166_v23  ;;  %v404_v4 = vsel %vm390_vm11, %v401_v54, %v403_v1  ;;  %v394_v44 = vsel %vm392_vm9, %v382_v29, 2102212464  ;;  %v431_v43 = vshrl.u32 %v400_v0, 16 }
  0x55   :  { %vm306_vm13 = vcmp.lt.s32.totalorder %v305_v59, 0  ;;  %v307_v9 = vsub.s32 0, %v305_v59  ;;  %v408_v60 = vand.u32 65535, %v404_v4  ;;  %v409_v10 = vshrl.u32 %v404_v4, 16 }
  0x56   :  { %v170_v55 = vmul.f32 %v169_v52, %v167_v63  ;;  %v1016_v14 = vand.u32 3, %v176_v57  ;;  %v297_v15 = vadd.s32 %v942_v50, %v946_v58  ;;  %v393_v42 = vsel %vm389_vm7, %v373_v20, %v376_v11 }
  0x57   :  { %v308_v25 = vsel %vm306_vm13, %v307_v9, %v305_v59  ;;  %v410_v12 = vmul.u32 %v408_v60, %v406_v6  ;;  %v411_v13 = vmul.u32 %v409_v10, %v406_v6  ;;  %v1020_v21 = vmul.u32 %v408_v60, %v407_v7 }
  0x58   :  { %v171_v35 = vxor.u32 2147483648, %v170_v55  ;;  %v309_v3 = vclz %v308_v25  ;;  %v395_v30 = vsel %vm391_vm8, %v379_v28, %v394_v44  ;;  %v413_v34 = vmul.u32 %v409_v10, %v407_v7 }
  0x59   :  { %v414_v27 = vshll.u32 %v411_v13, 16  ;;  %v430_v50 = vand.u32 65535, %v400_v0  ;;  %v1035_v31 = vmul.u32 %v431_v43, %v406_v6  ;;  %v416_v11 = vshll.u32 %v1020_v21, 16 }
  0x5a   :  { %v172_v26 = vsel %vm51_vm10, %v171_v35, %v170_v55  ;;  %v692_v56 = vadd.s32 4294967294, %v309_v3  ;;  %v415_v37 = vshrl.u32 %v411_v13, 16  ;;  %vm198_vm0 = vcmp.eq.s32.totalorder %v1016_v14, 2 }
  0x5b   :  { %v1029_v29 = vsel %vm992_vm12, %v787_v16, %v172_v26  ;;  %vm418_vm15 = vc.u32 %v410_v12, %v414_v27  ;;  %v420_v41 = vadd.s32 %v414_v27, %v410_v12  ;;  %v432_v48 = vmul.u32 %v430_v50, %v406_v6 }
  0x5c   :  { %v177_v58 = vmul.f32 %v1029_v29, %v1029_v29  ;;  %vm693_vm14 = vcmp.lt.s32.totalorder %v692_v56, 0  ;;  %v419_v38 = vsel %vm418_vm15, 1, %v770_v5  ;;  %v434_v23 = vmul.u32 %v430_v50, %v407_v7 }
  0x5d   :  { %v312_v36 = vsel %vm693_vm14, 0, %v692_v56  ;;  %v421_v46 = vadd.s32 %v419_v38, %v413_v34  ;;  %vm422_vm1 = vc.u32 %v420_v41, %v416_v11  ;;  %v435_v20 = vmul.u32 %v431_v43, %v407_v7 }
  0x5e   :  { %v178_v24 = vmul.f32 -0.001358992, %v177_v58  ;;  %v185_v32 = vmul.f32 -0.00019511016, %v177_v58  ;;  %v313_v39 = vsub.s32 32, %v312_v36  ;;  %v314_v40 = vshll.u32 %v305_v59, %v312_v36 }
  0x5f   :  { %v317_v28 = vsub.s32 4294967266, %v312_v36  ;;  %v436_v0 = vshll.u32 %v1035_v31, 16  ;;  %vm205_vm2 = vcmp.lt.s32.totalorder %v789_v17, 0  ;;  %v423_v4 = vsel %vm422_vm1, 1, %v770_v5 }
  0x60   :  { %v179_v52 = vadd.f32 0.041655596, %v178_v24  ;;  %v186_v54 = vadd.f32 0.008332121, %v185_v32  ;;  %v315_v57 = vshrl.u32 %v297_v15, %v313_v39  ;;  %vm1045_vm3 = vcmp.le.f32.partialorder %v203_v22, 0.7853982 }
  0x61   :  { %v318_v63 = vadd.s32 127, %v317_v28  ;;  %v417_v60 = vshrl.u32 %v1020_v21, 16  ;;  %v425_v10 = vadd.s32 %v423_v4, %v421_v46  ;;  %v438_v7 = vshll.u32 %v434_v23, 16 }
  0x62   :  { %v180_v1 = vmul.f32 %v179_v52, %v177_v58  ;;  %v187_v9 = vmul.f32 %v186_v54, %v177_v58  ;;  %v316_v59 = vor.u32 %v315_v57, %v314_v40  ;;  %vm440_vm4 = vc.u32 %v432_v48, %v436_v0 }
  0x63   :  { %v319_v55 = vshll.u32 %v318_v63, 23  ;;  %v426_v3 = vadd.s32 %v425_v10, %v415_v37  ;;  %v441_v12 = vsel %vm440_vm4, 1, %v770_v5  ;;  %v442_v13 = vadd.s32 %v436_v0, %v432_v48 }
  0x64   :  { %v181_v25 = vadd.f32 -0.4999988, %v180_v1  ;;  %v188_v44 = vadd.f32 -0.16666654, %v187_v9  ;;  %v323_v43 = vcvt.s32.f32 %v316_v59  ;;  %v327_v22 = vsub.s32 4, %v977_v33 }
  0x65   :  { %v320_v35 = vor.u32 4788187, %v319_v55  ;;  %v443_v56 = vadd.s32 %v441_v12, %v435_v20  ;;  %v396_v21 = vsel %vm390_vm11, %v393_v42, %v395_v30  ;;  %v437_v34 = vshrl.u32 %v1035_v31, 16 }
  0x66   :  { %v182_v15 = vmul.f32 %v181_v25, %v177_v58  ;;  %v189_v26 = vmul.f32 %v188_v44, %v177_v58  ;;  %vm444_vm5 = vc.u32 %v442_v13, %v438_v7  ;;  %v514_v38 = vand.u32 2139095040, %v793_v19 }
  0x67   :  { %v321_v27 = vand.u32 2147483647, %v320_v35  ;;  %v445_v11 = vsel %vm444_vm5, 1, %v770_v5  ;;  %v1057_v24 = vadd.s32 %v426_v3, %v417_v60  ;;  %v439_v58 = vshrl.u32 %v434_v23, 16 }
  0x68   :  { %v183_v50 = vadd.f32 1.0, %v182_v15  ;;  %v190_v36 = vadd.f32 1.0, %v189_v26  ;;  %v447_v32 = vadd.s32 %v445_v11, %v443_v56  ;;  %v1060_v28 = vadd.s32 %v442_v13, %v438_v7 }
  0x69   :  { %v324_v41 = vmul.f32 %v323_v43, %v321_v27  ;;  %v515_v2 = vshrl.u32 %v514_v38, 23  ;;  %vm194_vm6 = vcmp.lt.s32.totalorder %v1016_v14, 2  ;;  %vm195_vm7 = vcmp.eq.s32.totalorder %v1016_v14, 0 }
  0x6a   :  { %v191_v39 = vmul.f32 %v190_v36, %v1029_v29  ;;  %v199_v40 = vxor.u32 2147483648, %v183_v50  ;;  %v448_v30 = vadd.s32 %v447_v32, %v437_v34  ;;  %v328_v48 = vsel %vm205_vm2, %v327_v22, %v977_v33 }
  0x6b   :  { %v325_v42 = vxor.u32 2147483648, %v324_v41  ;;  %v697_v23 = vadd.s32 4294967169, %v515_v2  ;;  %vm192_vm8 = vweird.f32 %v787_v16  ;;  %v450_v54 = vmul.u32 %v1002_v61, %v396_v21 }
  0x6c   :  { %v196_v31 = vxor.u32 2147483648, %v191_v39  ;;  %v200_v46 = vsel %vm198_vm0, %v199_v40, %v191_v39  ;;  %v449_v52 = vadd.s32 %v448_v30, %v439_v58  ;;  %vm452_vm9 = vc.u32 %v1057_v24, %v1060_v28 }
  0x6d   :  { %v326_v29 = vsel %vm205_vm2, %v325_v42, %v324_v41  ;;  %v521_v63 = vadd.s32 1, %v697_v23  ;;  %v330_v16 = vsel %vm1045_vm3, 0, %v328_v48  ;;  %v511_v61 = vand.u32 2147483647, %v793_v19 }
  0x6e   :  { %v197_v57 = vsel %vm195_vm7, %v183_v50, %v196_v31  ;;  %v329_v37 = vsel %vm1045_vm3, %v789_v17, %v326_v29  ;;  %v453_v0 = vadd.s32 1, %v449_v52  ;;  %v347_v60 = vand.u32 3, %v330_v16 }
  0x6f   :  { %v201_v33 = vsel %vm194_vm6, %v197_v57, %v200_v46  ;;  %v331_v20 = vmul.f32 %v329_v37, %v329_v37  ;;  %vm522_vm10 = vcmp.gt.s32.totalorder %v521_v63, 0  ;;  %v518_v6 = vand.u32 8388607, %v511_v61 }
  0x70   :  { %v202_v1 = vsel %vm192_vm8, nan, %v201_v33  ;;  %v454_v4 = vsel %vm452_vm9, %v453_v0, %v449_v52  ;;  %v523_v55 = vsel %vm522_vm10, %v521_v63, 0  ;;  %vm349_vm11 = vcmp.eq.s32.totalorder %v347_v60, 0 }
  0x71   :  { %v332_v9 = vmul.f32 -0.001358992, %v331_v20  ;;  %v339_v59 = vmul.f32 -0.00019511016, %v331_v20  ;;  %665 = vst [vmem:[#allocation5] sm:$0xff] %v202_v1  ;;  %v455_v10 = vadd.s32 %v454_v4, %v450_v54  ;;  %v525_v7 = vand.u32 31, %v523_v55 }
  0x72   :  { %vm348_vm12 = vcmp.lt.s32.totalorder %v347_v60, 2  ;;  %vm352_vm13 = vcmp.eq.s32.totalorder %v347_v60, 2  ;;  %v519_v36 = vor.u32 8388608, %v518_v6  ;;  %v1094_v11 = vshrl.u32 %v523_v55, 5 }
  0x73   :  { %v333_v25 = vadd.f32 0.041655596, %v332_v9  ;;  %v340_v14 = vadd.f32 0.008332121, %v339_v59  ;;  %v456_v44 = vadd.s32 536870912, %v455_v10  ;;  %v526_v43 = vsub.s32 32, %v525_v7 }
  0x74   :  { %v528_v12 = vshll.u32 %v764_v45, %v525_v7  ;;  %v531_v26 = vshll.u32 %v765_v47, %v525_v7  ;;  %v537_v22 = vshll.u32 %v767_v51, %v525_v7  ;;  %v534_v58 = vshll.u32 %v766_v49, %v525_v7 }
  0x75   :  { %v334_v35 = vmul.f32 %v333_v25, %v331_v20  ;;  %v341_v3 = vmul.f32 %v340_v14, %v331_v20  ;;  %v1086_v13 = vshrl.u32 %v456_v44, 30  ;;  %v529_v15 = vshrl.u32 %v765_v47, %v526_v43 }
  0x76   :  { %v532_v21 = vshrl.u32 %v766_v49, %v526_v43  ;;  %v538_v34 = vshrl.u32 %v768_v53, %v526_v43  ;;  %v535_v47 = vshrl.u32 %v767_v51, %v526_v43  ;;  %v540_v40 = vshll.u32 %v768_v53, %v525_v7 }
  0x77   :  { %v335_v56 = vadd.f32 -0.4999988, %v334_v35  ;;  %v342_v27 = vadd.f32 -0.16666654, %v341_v3  ;;  %v458_v50 = vshll.u32 %v1086_v13, 30  ;;  %v530_v39 = vor.u32 %v529_v15, %v528_v12 }
  0x78   :  { %v541_v2 = vshrl.u32 %v769_v62, %v526_v43  ;;  %v1100_v31 = vor.u32 %v532_v21, %v531_v26  ;;  %v539_v46 = vor.u32 %v538_v34, %v537_v22  ;;  %vm543_vm15 = vcmp.lt.s32.totalorder %v1094_v11, 1 }
  0x79   :  { %v336_v38 = vmul.f32 %v335_v56, %v331_v20  ;;  %v343_v41 = vmul.f32 %v342_v27, %v331_v20  ;;  %v459_v32 = vsub.s32 %v455_v10, %v458_v50  ;;  %v536_v52 = vor.u32 %v535_v47, %v534_v58 }
  0x7a   :  { %v542_v23 = vor.u32 %v541_v2, %v540_v40  ;;  %vm546_vm0 = vcmp.lt.s32.totalorder %v1094_v11, 4  ;;  %vm544_vm1 = vcmp.lt.s32.totalorder %v1094_v11, 2  ;;  %vm545_vm2 = vcmp.lt.s32.totalorder %v1094_v11, 3 }
  0x7b   :  { %v337_v42 = vadd.f32 1.0, %v336_v38  ;;  %v344_v30 = vadd.f32 1.0, %v343_v41  ;;  %vm460_vm14 = vcmp.lt.s32.totalorder %v459_v32, 0  ;;  %v461_v48 = vsub.s32 0, %v459_v32 }
  0x7c   :  { %v1106_v53 = vshll.u32 %v519_v36, 8  ;;  %v551_v63 = vsel %vm543_vm15, %v530_v39, %v1100_v31  ;;  %vm346_vm3 = vweird.f32 %v789_v17  ;;  %v556_v33 = vsel %vm546_vm0, %v542_v23, 1326507024 }
  0x7d   :  { %v345_v29 = vmul.f32 %v344_v30, %v329_v37  ;;  %v353_v49 = vxor.u32 2147483648, %v337_v42  ;;  %v462_v51 = vsel %vm460_vm14, %v461_v48, %v459_v32  ;;  %v552_v37 = vsel %vm546_vm0, %v539_v46, 920167782 }
  0x7e   :  { %v463_v57 = vclz %v462_v51  ;;  %v553_v0 = vsel %vm545_vm2, %v536_v52, %v552_v37  ;;  %v555_v1 = vsel %vm543_vm15, %v1100_v31, %v536_v52  ;;  %v451_v17 = vadd.s32 %v1060_v28, %v1057_v24 }
  0x7f   :  { %v350_v62 = vxor.u32 2147483648, %v345_v29  ;;  %v354_v54 = vsel %vm352_vm13, %v353_v49, %v345_v29  ;;  %v554_v59 = vsel %vm544_vm1, %v551_v63, %v553_v0  ;;  %v557_v4 = vsel %vm545_vm2, %v539_v46, %v556_v33 }
  0x80   :  { %v695_v20 = vadd.s32 4294967294, %v463_v57  ;;  %v560_v10 = vand.u32 65535, %v1106_v53  ;;  %v561_v7 = vshrl.u32 %v1106_v53, 16  ;;  %v527_v14 = vshrl.u32 %v764_v45, %v526_v43 }
  0x81   :  { %v351_v16 = vsel %vm349_vm11, %v337_v42, %v350_v62  ;;  %v558_v60 = vsel %vm544_vm1, %v555_v1, %v557_v4  ;;  %v585_v44 = vshrl.u32 %v554_v59, 16  ;;  %v584_v35 = vand.u32 65535, %v554_v59 }
  0x82   :  { %v355_v9 = vsel %vm348_vm12, %v351_v16, %v354_v54  ;;  %vm696_vm4 = vcmp.lt.s32.totalorder %v695_v20, 0  ;;  %v562_v3 = vand.u32 65535, %v558_v60  ;;  %v563_v12 = vshrl.u32 %v558_v60, 16 }
  0x83   :  { %v356_v55 = vsel %vm346_vm3, nan, %v355_v9  ;;  %v466_v25 = vsel %vm696_vm4, 0, %v695_v20  ;;  %v587_v22 = vmul.u32 %v585_v44, %v560_v10  ;;  %vm359_vm5 = vcmp.lt.s32.totalorder %v791_v18, 0 }
  0x84   :  { %666 = vst [vmem:[#allocation5 + $0x8] sm:$0xff] %v356_v55  ;;  %v467_v24 = vsub.s32 32, %v466_v25  ;;  %v468_v28 = vshll.u32 %v459_v32, %v466_v25  ;;  %v471_v6 = vsub.s32 4294967266, %v466_v25  ;;  %v547_v56 = vsel %vm543_vm15, %v527_v14, %v530_v39 }
  0x85   :  { %v564_v45 = vmul.u32 %v562_v3, %v560_v10  ;;  %v565_v43 = vmul.u32 %v563_v12, %v560_v10  ;;  %v566_v27 = vmul.u32 %v562_v3, %v561_v7  ;;  %v586_v50 = vmul.u32 %v584_v35, %v560_v10 }
  0x86   :  { %v469_v15 = vshrl.u32 %v451_v17, %v467_v24  ;;  %v472_v26 = vadd.s32 127, %v471_v6  ;;  %v588_v36 = vmul.u32 %v584_v35, %v561_v7  ;;  %v548_v38 = vsel %vm546_vm0, %v536_v52, 2102212464 }
  0x87   :  { %v567_v41 = vmul.u32 %v563_v12, %v561_v7  ;;  %v568_v58 = vshll.u32 %v565_v43, 16  ;;  %v570_v47 = vshll.u32 %v566_v27, 16  ;;  %v589_v2 = vmul.u32 %v585_v44, %v561_v7 }
  0x88   :  { %v470_v21 = vor.u32 %v469_v15, %v468_v28  ;;  %v473_v34 = vshll.u32 %v472_v26, 23  ;;  %v590_v42 = vshll.u32 %v587_v22, 16  ;;  %v569_v30 = vshrl.u32 %v565_v43, 16 }
  0x89   :  { %vm572_vm6 = vc.u32 %v564_v45, %v568_v58  ;;  %v574_v39 = vadd.s32 %v568_v58, %v564_v45  ;;  %v592_v46 = vshll.u32 %v588_v36, 16  ;;  %v591_v51 = vshrl.u32 %v587_v22, 16 }
  0x8a   :  { %v474_v32 = vor.u32 4788187, %v473_v34  ;;  %v477_v40 = vcvt.s32.f32 %v470_v21  ;;  %v573_v23 = vsel %vm572_vm6, 1, %v770_v5  ;;  %vm594_vm7 = vc.u32 %v586_v50, %v590_v42 }
  0x8b   :  { %v596_v29 = vadd.s32 %v590_v42, %v586_v50  ;;  %v575_v49 = vadd.s32 %v573_v23, %v567_v41  ;;  %vm576_vm8 = vc.u32 %v574_v39, %v570_v47  ;;  %v595_v52 = vsel %vm594_vm7, 1, %v770_v5 }
  0x8c   :  { %v475_v48 = vand.u32 2147483647, %v474_v32  ;;  %v577_v54 = vsel %vm576_vm8, 1, %v770_v5  ;;  %v597_v57 = vadd.s32 %v595_v52, %v589_v2  ;;  %v549_v63 = vsel %vm545_vm2, %v1100_v31, %v548_v38 }
  0x8d   :  { %vm598_vm9 = vc.u32 %v596_v29, %v592_v46  ;;  %v571_v37 = vshrl.u32 %v566_v27, 16  ;;  %v579_v33 = vadd.s32 %v577_v54, %v575_v49  ;;  %vm1149_vm10 = vcmp.le.f32.partialorder %v357_v8, 0.7853982 }
  0x8e   :  { %v478_v62 = vmul.f32 %v477_v40, %v475_v48  ;;  %v599_v16 = vsel %vm598_vm9, 1, %v770_v5  ;;  %v593_v1 = vshrl.u32 %v588_v36, 16  ;;  %v600_v59 = vadd.s32 %v596_v29, %v592_v46 }
  0x8f   :  { %v601_v9 = vadd.s32 %v599_v16, %v597_v57  ;;  %v580_v17 = vadd.s32 %v579_v33, %v569_v30  ;;  %v550_v31 = vsel %vm544_vm1, %v547_v56, %v549_v63  ;;  %v481_v5 = vsub.s32 4, %v1086_v13 }
  0x90   :  { %v479_v0 = vxor.u32 2147483648, %v478_v62  ;;  %v604_v14 = vmul.u32 %v1106_v53, %v550_v31  ;;  %vm500_vm0 = vweird.f32 %v791_v18  ;;  %vm513_vm2 = vcmp.lt.s32.totalorder %v793_v19, 0 }
  0x91   :  { %v602_v55 = vadd.s32 %v601_v9, %v591_v51  ;;  %v581_v10 = vadd.s32 %v580_v17, %v571_v37  ;;  %v482_v11 = vsel %vm359_vm5, %v481_v5, %v1086_v13  ;;  %vm1171_vm3 = vcmp.le.f32.partialorder %v511_v61, 0.7853982 }
  0x92   :  { %v480_v4 = vsel %vm359_vm5, %v479_v0, %v478_v62  ;;  %v484_v12 = vsel %vm1149_vm10, 0, %v482_v11  ;;  %vm654_vm7 = vweird.f32 %v793_v19 }
  0x93   :  { %v483_v8 = vsel %vm1149_vm10, %v791_v18, %v480_v4  ;;  %v603_v25 = vadd.s32 %v602_v55, %v593_v1  ;;  %vm606_vm11 = vc.u32 %v581_v10, %v600_v59  ;;  %v501_v45 = vand.u32 3, %v484_v12 }
  0x94   :  { %v485_v7 = vmul.f32 %v483_v8, %v483_v8  ;;  %v605_v48 = vadd.s32 %v600_v59, %v581_v10 }
  0x95   :  { %v607_v24 = vadd.s32 1, %v603_v25  ;;  %vm506_vm12 = vcmp.eq.s32.totalorder %v501_v45, 2  ;;  %vm503_vm13 = vcmp.eq.s32.totalorder %v501_v45, 0  ;;  %vm502_vm15 = vcmp.lt.s32.totalorder %v501_v45, 2 }
  0x96   :  { %v486_v60 = vmul.f32 -0.001358992, %v485_v7  ;;  %v493_v44 = vmul.f32 -0.00019511016, %v485_v7 }
  0x97   :  { %v608_v35 = vsel %vm606_vm11, %v607_v24, %v603_v25 }
  0x98   :  { %v487_v28 = vadd.f32 0.041655596, %v486_v60  ;;  %v494_v6 = vadd.f32 0.008332121, %v493_v44  ;;  %v609_v3 = vadd.s32 %v608_v35, %v604_v14 }
  0x9a   :  { %v488_v15 = vmul.f32 %v487_v28, %v485_v7  ;;  %v495_v26 = vmul.f32 %v494_v6, %v485_v7  ;;  %v610_v22 = vadd.s32 536870912, %v609_v3 }
  0x9c   :  { %v489_v56 = vadd.f32 -0.4999988, %v488_v15  ;;  %v496_v53 = vadd.f32 -0.16666654, %v495_v26  ;;  %v611_v43 = vshrl.u32 %v610_v22, 30 }
  0x9e   :  { %v490_v27 = vmul.f32 %v489_v56, %v485_v7  ;;  %v497_v21 = vmul.f32 %v496_v53, %v485_v7  ;;  %v612_v34 = vshll.u32 %v611_v43, 30  ;;  %v635_v1 = vsub.s32 4, %v611_v43 }
  0xa0   :  { %v491_v50 = vadd.f32 1.0, %v490_v27  ;;  %v498_v36 = vadd.f32 1.0, %v497_v21  ;;  %v613_v13 = vsub.s32 %v609_v3, %v612_v34  ;;  %v636_v31 = vsel %vm513_vm2, %v635_v1, %v611_v43 }
  0xa2   :  { %v499_v38 = vmul.f32 %v498_v36, %v483_v8  ;;  %v507_v41 = vxor.u32 2147483648, %v491_v50  ;;  %vm614_vm14 = vcmp.lt.s32.totalorder %v613_v13, 0  ;;  %v615_v58 = vsub.s32 0, %v613_v13 }
  0xa3   :  { %v638_v8 = vsel %vm1171_vm3, 0, %v636_v31 }
  0xa4   :  { %v504_v47 = vxor.u32 2147483648, %v499_v38  ;;  %v508_v32 = vsel %vm506_vm12, %v507_v41, %v499_v38  ;;  %v616_v40 = vsel %vm614_vm14, %v615_v58, %v613_v13  ;;  %v655_v14 = vand.u32 3, %v638_v8 }
  0xa5   :  { %v617_v42 = vclz %v616_v40 }
  0xa6   :  { %v505_v2 = vsel %vm503_vm13, %v491_v50, %v504_v47  ;;  %vm660_vm4 = vcmp.eq.s32.totalorder %v655_v14, 2  ;;  %vm657_vm5 = vcmp.eq.s32.totalorder %v655_v14, 0  ;;  %vm656_vm6 = vcmp.lt.s32.totalorder %v655_v14, 2 }
  0xa7   :  { %v509_v30 = vsel %vm502_vm15, %v505_v2, %v508_v32  ;;  %v698_v46 = vadd.s32 4294967294, %v617_v42 }
  0xa8   :  { %v510_v39 = vsel %vm500_vm0, nan, %v509_v30 }
  0xa9   :  { %667 = vst [vmem:[#allocation5 + $0x10] sm:$0xff] %v510_v39  ;;  %vm699_vm1 = vcmp.lt.s32.totalorder %v698_v46, 0 }
  0xaa   :  { %v620_v23 = vsel %vm699_vm1, 0, %v698_v46 }
  0xab   :  { %v621_v29 = vsub.s32 32, %v620_v23  ;;  %v622_v49 = vshll.u32 %v613_v13, %v620_v23  ;;  %v625_v51 = vsub.s32 4294967266, %v620_v23 }
  0xad   :  { %v623_v52 = vshrl.u32 %v605_v48, %v621_v29  ;;  %v626_v62 = vadd.s32 127, %v625_v51 }
  0xaf   :  { %v624_v54 = vor.u32 %v623_v52, %v622_v49  ;;  %v627_v57 = vshll.u32 %v626_v62, 23 }
  0xb1   :  { %v628_v63 = vor.u32 4788187, %v627_v57  ;;  %v631_v37 = vcvt.s32.f32 %v624_v54 }
  0xb3   :  { %v629_v18 = vand.u32 2147483647, %v628_v63 }
  0xb5   :  { %v632_v33 = vmul.f32 %v631_v37, %v629_v18 }
  0xb7   :  { %v633_v20 = vxor.u32 2147483648, %v632_v33 }
  0xb9   :  { %v634_v0 = vsel %vm513_vm2, %v633_v20, %v632_v33 }
  0xba   :  { %v637_v9 = vsel %vm1171_vm3, %v793_v19, %v634_v0 }
  0xbb   :  { %v639_v17 = vmul.f32 %v637_v9, %v637_v9 }
  0xbd   :  { %v640_v59 = vmul.f32 -0.001358992, %v639_v17  ;;  %v647_v4 = vmul.f32 -0.00019511016, %v639_v17 }
  0xbf   :  { %v641_v55 = vadd.f32 0.041655596, %v640_v59  ;;  %v648_v5 = vadd.f32 0.008332121, %v647_v4 }
  0xc1   :  { %v642_v61 = vmul.f32 %v641_v55, %v639_v17  ;;  %v649_v10 = vmul.f32 %v648_v5, %v639_v17 }
  0xc3   :  { %v643_v7 = vadd.f32 -0.4999988, %v642_v61  ;;  %v650_v25 = vadd.f32 -0.16666654, %v649_v10 }
  0xc5   :  { %v644_v60 = vmul.f32 %v643_v7, %v639_v17  ;;  %v651_v44 = vmul.f32 %v650_v25, %v639_v17 }
  0xc7   :  { %v645_v24 = vadd.f32 1.0, %v644_v60  ;;  %v652_v11 = vadd.f32 1.0, %v651_v44 }
  0xc9   :  { %v653_v28 = vmul.f32 %v652_v11, %v637_v9  ;;  %v661_v6 = vxor.u32 2147483648, %v645_v24 }
  0xcb   :  { %v658_v35 = vxor.u32 2147483648, %v653_v28  ;;  %v662_v3 = vsel %vm660_vm4, %v661_v6, %v653_v28 }
  0xcd   :  { %v659_v12 = vsel %vm657_vm5, %v645_v24, %v658_v35 }
  0xce   :  { %v663_v15 = vsel %vm656_vm6, %v659_v12, %v662_v3 }
  0xcf   :  { %v664_v26 = vsel %vm654_vm7, nan, %v663_v15 }
  0xd0   :  { %668 = vst [vmem:[#allocation5 + $0x18] sm:$0xff] %v664_v26 }
  0xd1   :  { %681 = dma.vmem_to_hbm [thread:$0]  %s674_s11, 512, %s676_s14, [#allocation4], %s772_s15, %s772_s15, %s773_s16  }
  0xd2   :  { %761 = dma.done.wait [#allocation4], 512  }
  0xd3   :  { %762 = vsyncadd [#allocation4], 4294966784 }
  0xd4   :  { %686 = vsyncpa [#allocation3], 1 }
  0xd5   :  { %687 = vsyncpa [#allocation4], 1 }

</bundles_post_ra>
